<compile_context>
chip_gen: v7x
topology: tpu7x:2x2x1
jax: 0.10.0
libtpu: 0.0.40
codegen_flags: <defaults>
</compile_context>

<pallas_src>
import functools

import jax
import jax.numpy as jnp
from jax.experimental import pallas as pl
from jax.experimental.pallas import tpu as pltpu


# ---------------------------------------------------------------------------
# Pallas kernel 1: EMA parameter blend  out = alpha*ema + (1-alpha)*param
# ---------------------------------------------------------------------------
def _ema_kernel(ema_ref, param_ref, out_ref, *, alpha):
    out_ref[...] = alpha * ema_ref[...] + (1.0 - alpha) * param_ref[...]


def ema_blend_leaf(ema, param, alpha, *, max_block_rows=1024):
    """alpha*ema + (1-alpha)*param for a single pytree leaf.

    The leaf is viewed as a lane-dense (rows, 128) array (tiny tail pad only),
    blended with large row tiles (amortizes the ~0.35us/grid-step pipeline
    overhead), and the EMA operand is aliased to the output so the update is
    done in place -- no concat / pad / unflatten round trips through HBM.
    """
    orig_shape = ema.shape
    orig_dtype = ema.dtype
    n = int(ema.size)
    lanes = 128
    rows = -(-n // lanes)                            # ceil
    tr = min(-(-rows // 8) * 8, max_block_rows)      # row tile, multiple of 8
    rows_p = -(-rows // tr) * tr
    pad = rows_p * lanes - n

    e = ema.reshape(-1).astype(jnp.float32)
    p = param.reshape(-1).astype(jnp.float32)
    if pad:
        e = jnp.pad(e, (0, pad))
        p = jnp.pad(p, (0, pad))
    e2 = e.reshape(rows_p, lanes)
    p2 = p.reshape(rows_p, lanes)

    out = pl.pallas_call(
        functools.partial(_ema_kernel, alpha=float(alpha)),
        out_shape=jax.ShapeDtypeStruct((rows_p, lanes), jnp.float32),
        grid=(rows_p // tr,),
        in_specs=[pl.BlockSpec((tr, lanes), lambda i: (i, 0)),
                  pl.BlockSpec((tr, lanes), lambda i: (i, 0))],
        out_specs=pl.BlockSpec((tr, lanes), lambda i: (i, 0)),
        input_output_aliases={0: 0},                 # update the EMA buffer in place
        compiler_params=pltpu.CompilerParams(dimension_semantics=("parallel",)),
    )(e2, p2)
    return out.reshape(-1)[:n].reshape(orig_shape).astype(orig_dtype)


# ---------------------------------------------------------------------------
# Pallas kernel 2: fused conv3x3+bias+ReLU -> conv1x1+bias, im2col in-kernel
# ---------------------------------------------------------------------------
def _fused_conv_kernel(x_ref, w1_ref, b1_ref, w2_ref, b2_ref, o_ref, *,
                       th, W, C, n_bands):
    """One H-band of: logits = (relu(conv3x3(x)+b1)) @ w2 + b2.

    x_ref : (1, H+2, W+2, C)  f32  spatially padded NHWC image (resident)
    w1_ref: (9, C, Hd_pad)    bf16 conv1 weights, one (C, Hd_pad) slab per tap
    b1_ref: (1, Hd_pad)       f32
    w2_ref: (Hd_pad, NC_pad)  bf16
    b2_ref: (1, NC_pad)       f32
    o_ref : (1, th*W, NC_pad) f32  lane-dense logits tile

    The 3x3 conv is evaluated as a sum over the 9 shifted taps of the band
    (im2col never materialized in HBM); the hidden activation stays in
    VMEM/vregs; MXU inputs are bf16 with f32 accumulation; the bias+ReLU
    epilogue stays f32 (v5e has no bf16 VPU).
    """
    tm = th * W
    if n_bands == 1:
        band = x_ref[0]                                     # (th+2, W+2, C)
    else:
        i = pl.program_id(1)
        band = x_ref[0, pl.ds(i * th, th + 2), :, :]        # 1-row halo each side

    h = None
    for dh in range(3):
        for dw in range(3):
            t = dh * 3 + dw
            tap = band[dh:dh + th, dw:dw + W, :].reshape(tm, C).astype(jnp.bfloat16)
            contrib = jnp.dot(tap, w1_ref[t], preferred_element_type=jnp.float32)
            h = contrib if h is None else h + contrib
    h = jnp.maximum(h + b1_ref[...], 0.0)                   # f32 epilogue

    out = jnp.dot(h.astype(jnp.bfloat16), w2_ref[...],
                  preferred_element_type=jnp.float32)
    o_ref[0] = (out + b2_ref[...]).astype(o_ref.dtype)


def _round_up(x, m):
    return -(-x // m) * m


def _pick_band(H, W, max_rows=512):
    """Largest H-band height th (dividing H) with th*W rows <= max_rows."""
    best = 1
    for th in range(1, H + 1):
        if H % th == 0 and th * W <= max_rows:
            best = th
    if H // best > 1 and (best * W) % 8 != 0:
        best = H     # multi-band tiles need th*W % 8 == 0; fall back to one band
    return best


def fused_conv_forward(params, x_nchw):
    """Forward of the synthetic EMA model via one fused Pallas kernel."""
    N, C, H, W = x_nchw.shape
    Hd = params["w1"].shape[1]
    NC = params["w2"].shape[1]
    Hd_pad = _round_up(Hd, 128)      # lane-dense hidden
    NC_pad = _round_up(NC, 128)      # lane-dense output (unmasked stores)

    x_nhwc = jnp.transpose(x_nchw, (0, 2, 3, 1)).astype(jnp.float32)
    xp = jnp.pad(x_nhwc, ((0, 0), (1, 1), (1, 1), (0, 0)))   # (N, H+2, W+2, C)

    # One-time (tiny) weight padding / bf16 cast; EMA master copy stays f32.
    w1p = (jnp.zeros((9, C, Hd_pad), jnp.float32)
           .at[:, :, :Hd].set(params["w1"].reshape(9, C, Hd))
           .astype(jnp.bfloat16))
    b1p = jnp.zeros((1, Hd_pad), jnp.float32).at[0, :Hd].set(params["b1"])
    w2p = (jnp.zeros((Hd_pad, NC_pad), jnp.float32)
           .at[:Hd, :NC].set(params["w2"])
           .astype(jnp.bfloat16))
    b2p = jnp.zeros((1, NC_pad), jnp.float32).at[0, :NC].set(params["b2"])

    th = _pick_band(H, W)
    tm = th * W
    n_bands = H // th
    # TODO(synk): for very large spatial inputs also tile W (halo-DMA the padded
    # band) instead of keeping a full (H+2, W+2, C) image block resident in VMEM.

    flops = 2 * N * H * W * (9 * C * Hd_pad + Hd_pad * NC_pad)
    bytes_accessed = (xp.size * 4 + w1p.size * 2 + w2p.size * 2
                      + b1p.size * 4 + b2p.size * 4 + N * H * W * NC_pad * 4)

    out = pl.pallas_call(
        functools.partial(_fused_conv_kernel, th=th, W=W, C=C, n_bands=n_bands),
        out_shape=jax.ShapeDtypeStruct((N, H * W, NC_pad), jnp.float32),
        grid=(N, n_bands),
        in_specs=[
            pl.BlockSpec((1, H + 2, W + 2, C), lambda n, i: (n, 0, 0, 0)),
            pl.BlockSpec((9, C, Hd_pad), lambda n, i: (0, 0, 0)),     # resident
            pl.BlockSpec((1, Hd_pad), lambda n, i: (0, 0)),           # resident
            pl.BlockSpec((Hd_pad, NC_pad), lambda n, i: (0, 0)),      # resident
            pl.BlockSpec((1, NC_pad), lambda n, i: (0, 0)),           # resident
        ],
        out_specs=pl.BlockSpec((1, tm, NC_pad), lambda n, i: (n, i, 0)),
        compiler_params=pltpu.CompilerParams(
            dimension_semantics=("parallel", "parallel")),
        cost_estimate=pl.CostEstimate(flops=flops, transcendentals=0,
                                      bytes_accessed=bytes_accessed),
    )(xp, w1p, b1p, w2p, b2p)

    logits_nhwc = out[:, :, :NC].reshape(N, H, W, NC)
    return jnp.transpose(logits_nhwc, (0, 3, 1, 2))          # back to NCHW


# ---------------------------------------------------------------------------
# Synthetic wrapped model (deterministic init) + pure-JAX reference
# ---------------------------------------------------------------------------
def init_model_params(key, cin, hidden, num_classes):
    k1, k2, k3, k4 = jax.random.split(key, 4)
    # conv1: 3x3 stored matmul-ready as (9*cin, hidden); row order (kh, kw, cin)
    w1 = jax.random.normal(k1, (9 * cin, hidden), jnp.float32) * 0.1
    b1 = jax.random.normal(k2, (hidden,), jnp.float32) * 0.1
    # conv2: 1x1 -> (hidden, num_classes)
    w2 = jax.random.normal(k3, (hidden, num_classes), jnp.float32) * 0.1
    b2 = jax.random.normal(k4, (num_classes,), jnp.float32) * 0.1
    return {"w1": w1, "b1": b1, "w2": w2, "b2": b2}


def im2col_3x3_same(x_nhwc):
    """Reference-only im2col (the Pallas path builds patches in-kernel)."""
    N, H, W, C = x_nhwc.shape
    xpad = jnp.pad(x_nhwc, ((0, 0), (1, 1), (1, 1), (0, 0)))
    cols = []
    for dh in range(3):
        for dw in range(3):
            cols.append(xpad[:, dh:dh + H, dw:dw + W, :])
    patches = jnp.concatenate(cols, axis=-1)                 # (N, H, W, 9*C)
    return patches.reshape(N * H * W, 9 * C)


def reference_forward(params, target_img_nchw):
    N, C, H, W = target_img_nchw.shape
    x_nhwc = jnp.transpose(target_img_nchw, (0, 2, 3, 1)).astype(jnp.float32)
    patches = im2col_3x3_same(x_nhwc)
    h = jnp.maximum(patches @ params["w1"] + params["b1"], 0.0)
    out = h @ params["w2"] + params["b2"]
    nc = params["w2"].shape[1]
    return jnp.transpose(out.reshape(N, H, W, nc), (0, 3, 1, 2))


# ---------------------------------------------------------------------------
# EMATeacher in JAX (EMA update + forward both use the Pallas kernels)
# ---------------------------------------------------------------------------
class EMATeacherPallas:
    def __init__(self, model_params, alpha):
        self.alpha = float(alpha)
        # deepcopy(model) -> copy of the params
        self.ema_params = jax.tree_util.tree_map(jnp.array, model_params)

    def _init_ema_weights(self, model_params):
        self.ema_params = jax.tree_util.tree_map(jnp.array, model_params)

    def _update_ema(self, model_params, it):
        # Spec's _update_ema uses the fixed alpha (ignores `iter`); kept as-is.
        self.ema_params = jax.tree_util.tree_map(
            lambda e, p: ema_blend_leaf(e, p, self.alpha),
            self.ema_params, model_params)

    def update_weights(self, model_params, it):
        if it == 0:
            self._init_ema_weights(model_params)
        if it > 0:
            self._update_ema(model_params, it)

    def __call__(self, target_img_nchw):
        # Dropout/DropPath forced to eval: synthetic model has none (no-op).
        logits = fused_conv_forward(self.ema_params, target_img_nchw)
        outputs = (logits,)                    # wrapped model returns a tuple
        return outputs[0]


if __name__ == "__main__":
    key = jax.random.PRNGKey(0)
    k_model, k_img = jax.random.split(key, 2)

    batch, cin, hw = 2, 4, 16
    hidden, num_classes = 32, 8
    alpha = 0.99

    model_params = init_model_params(k_model, cin, hidden, num_classes)
    teacher = EMATeacherPallas(model_params, alpha)

    # iter 0: initialize EMA weights from the model
    teacher.update_weights(model_params, 0)

    # iter 1: simulate an updated student and do an EMA blend (Pallas kernel)
    model_params_step1 = jax.tree_util.tree_map(
        lambda p: p + 0.01 * jnp.ones_like(p), model_params)
    teacher.update_weights(model_params_step1, 1)

    # forward pass on target image (NCHW, like PyTorch)
    target_img = jax.random.normal(k_img, (batch, cin, hw, hw), jnp.float32)
    logits = teacher(target_img)
    logits = jax.block_until_ready(logits)

    # sanity check: EMA params (f32, should match tightly)
    ref_params = jax.tree_util.tree_map(
        lambda e, m: alpha * e + (1 - alpha) * m, model_params, model_params_step1)
    for name in ref_params:
        assert jnp.allclose(teacher.ema_params[name], ref_params[name],
                            atol=1e-6, rtol=1e-6), name

    # sanity check: forward (bf16 MXU inputs -> loose tolerance vs f32 reference)
    ref = reference_forward(ref_params, target_img)
    assert logits.shape == (batch, num_classes, hw, hw)
    assert jnp.allclose(logits, ref, atol=5e-2, rtol=5e-2)

    print("KERNEL_OK")
</pallas_src>

<mosaic_0001>
module attributes {stable_mosaic.version = 11 : i64} {
  func.func @_ema_kernel(%arg0: i32, %arg1: memref<8x128xf32, #tpu.memory_space<vmem>>, %arg2: memref<8x128xf32, #tpu.memory_space<vmem>>, %arg3: memref<8x128xf32, #tpu.memory_space<vmem>>) attributes {dimension_semantics = [#tpu.dimension_semantics<parallel>], iteration_bounds = array<i64: 1>, scalar_prefetch = 0 : i64, scratch_operands = 0 : i64, tpu.core_type = #tpu.core_type<tc>, window_params = [{transform_indices = @transform_0, window_bounds = array<i64: 8, 128>}, {transform_indices = @transform_1, window_bounds = array<i64: 8, 128>}, {transform_indices = @transform_2, window_bounds = array<i64: 8, 128>}]} {
    %c0 = arith.constant 0 : index
    %c0_0 = arith.constant 0 : index
    %0 = vector.load %arg1[%c0, %c0_0] : memref<8x128xf32, #tpu.memory_space<vmem>>, vector<8x128xf32>
    %cst = arith.constant 9.900000e-01 : f32
    %1 = vector.broadcast %cst : f32 to vector<8x128xf32>
    %2 = arith.mulf %1, %0 : vector<8x128xf32>
    %c0_1 = arith.constant 0 : index
    %c0_2 = arith.constant 0 : index
    %3 = vector.load %arg2[%c0_1, %c0_2] : memref<8x128xf32, #tpu.memory_space<vmem>>, vector<8x128xf32>
    %cst_3 = arith.constant 0.00999999977 : f32
    %4 = vector.broadcast %cst_3 : f32 to vector<8x128xf32>
    %5 = arith.mulf %4, %3 : vector<8x128xf32>
    %6 = arith.addf %2, %5 : vector<8x128xf32>
    %c0_4 = arith.constant 0 : index
    %c0_5 = arith.constant 0 : index
    %7 = vector.load %arg3[%c0_4, %c0_5] : memref<8x128xf32, #tpu.memory_space<vmem>>, vector<8x128xf32>
    tpu.vector_store %arg3[%c0_4, %c0_5], %6 {strides = array<i32>} : memref<8x128xf32, #tpu.memory_space<vmem>>, vector<8x128xf32>,
    return
  }
  func.func @transform_0(%arg0: i32) -> (i32, i32) {
    %c0_i32 = arith.constant 0 : i32
    %c0_i32_0 = arith.constant 0 : i32
    return %arg0, %c0_i32 : i32, i32
  }
  func.func @transform_1(%arg0: i32) -> (i32, i32) {
    %c0_i32 = arith.constant 0 : i32
    %c0_i32_0 = arith.constant 0 : i32
    return %arg0, %c0_i32 : i32, i32
  }
  func.func @transform_2(%arg0: i32) -> (i32, i32) {
    %c0_i32 = arith.constant 0 : i32
    %c0_i32_0 = arith.constant 0 : i32
    return %arg0, %c0_i32 : i32, i32
  }
}

</mosaic_0001>

<bundles_post_ra>
// kernel: tpu_custom_call.1
= control target key start
LH: loop header
LB: loop body
LE: loop exit
PB: predicated region body
PF: predicated region fallthrough
CT: control target
= control target key end

     0   :  { %7 = vsyncpa [#allocation3], 0  ;;  %s139_s0 = inlined_call_operand.hbm [shape: f32[8,128], index: 0, kind: input, shape index: {}, may-alias: {0,2}]   ;;  %s140_s1 = inlined_call_operand.vmem [shape: f32[8,128], index: 1, kind: input, shape index: {}]   ;;  %s141_s2 = inlined_call_operand.hbm [shape: f32[8,128], index: 2, kind: output, shape index: {}, may-alias: {0,2}]  }
   0x1   :  { %8 = vsyncpa [#allocation4], 0  ;;  %s95_s9 = smov [#allocation2]   ;;  %s47_s13 = scalar_lea.hbm %s139_s0, 128 }
   0x2   :  { %s15_s10 = sshll.u32 %s95_s9, 4  ;;  %p48_p0 = scmp.ne.s32.totalorder %s139_s0, %s47_s13  ;;  %s16_s10 = int_to_ptr.vmem [resolvable:$true] %s15_s10 }
   0x3   :  { %p51_p1 = scmp.lt.u32.totalorder %s47_s13, %s139_s0 }
   0x5   :  { %p53_p2 = pnand %p51_p1, %p48_p0 }
   0x7   :  { %56 = shalt.err (!%p53_p2)
}
   0x8   :  { %s57_s18 = scalar_lea.vmem %s16_s10, 128  ;;  %p62_p4 = scmp.lt.s32.totalorder %s16_s10, %s16_s10 }
   0x9   :  { %p58_p3 = scmp.ne.s32.totalorder %s16_s10, %s57_s18  ;;  %p63_p5 = scmp.lt.s32.totalorder %s57_s18, %s57_s18 }
   0xb   :  { %p64_p6 = por %p63_p5, %p62_p4 }
   0xd   :  { %p65_p7 = pnand %p64_p6, %p58_p3 }
   0xf   :  { %68 = shalt.err (!%p65_p7)
}
  0x10   :  { %18 = dma.hbm_to_vmem [thread:$0]  %s139_s0, 128, %s16_s10, [#allocation3]  }
  0x11   :  { %91 = dma.done.wait [#allocation3], 128  }
  0x12   :  { %92 = vsyncadd [#allocation3], 4294967168  ;;  %v24_v0 = vld [vmem:[#allocation2] sm:$0xff]  ;;  %s96_s23 = smov [#allocation5]  }
  0x13   :  { %v26_v1 = vld [vmem:[%s140_s1] sm:$0xff]  ;;  %s36_s24 = sshll.u32 %s96_s23, 4  ;;  %v25_v2 = vmul.f32 0.99, %v24_v0  ;;  %s37_s24 = int_to_ptr.vmem [resolvable:$true] %s36_s24 }
  0x14   :  { %v27_v3 = vmul.f32 0.01, %v26_v1  ;;  %s69_s25 = scalar_lea.vmem %s37_s24, 128  ;;  %p74_p9 = scmp.lt.s32.totalorder %s37_s24, %s37_s24 }
  0x15   :  { %p70_p8 = scmp.ne.s32.totalorder %s37_s24, %s69_s25  ;;  %p75_p10 = scmp.lt.s32.totalorder %s69_s25, %s69_s25 }
  0x16   :  { %v28_v4 = vadd.f32 %v27_v3, %v25_v2 }
  0x17   :  { %p76_p11 = por %p75_p10, %p74_p9 }
  0x18   :  { %29 = vst [vmem:[#allocation5] sm:$0xff] %v28_v4 }
  0x19   :  { %p77_p12 = pnand %p76_p11, %p70_p8 }
  0x1b   :  { %80 = shalt.err (!%p77_p12)
}
  0x1c   :  { %s81_s27 = scalar_lea.hbm %s141_s2, 128 }
  0x1d   :  { %p82_p13 = scmp.ne.s32.totalorder %s141_s2, %s81_s27  ;;  %p85_p0 = scmp.lt.u32.totalorder %s81_s27, %s141_s2 }
  0x1f   :  { %p87_p1 = pnand %p85_p0, %p82_p13 }
  0x21   :  { %90 = shalt.err (!%p87_p1)
}
  0x22   :  { %39 = dma.vmem_to_hbm [thread:$0]  %s37_s24, 128, %s141_s2, [#allocation4]  }
  0x23   :  { %93 = dma.done.wait [#allocation4], 128  }
  0x24   :  { %94 = vsyncadd [#allocation4], 4294967168 }
  0x25   :  { %43 = vsyncpa [#allocation3], 1 }
  0x26   :  { %44 = vsyncpa [#allocation4], 1 }

</bundles_post_ra>
